<compile_context>
chip_gen: v7x
topology: tpu7x:2x2x1
jax: 0.10.0
libtpu: 0.0.40
codegen_flags: <defaults>
</compile_context>

<pallas_src>
import functools

import jax
import jax.numpy as jnp
from jax.experimental import pallas as pl
from jax.experimental.pallas import tpu as pltpu

LANES = 128
LAYER_ROWS = LANES + 8          # 128 weight rows + 8 bias rows per hidden layer
BAYES_ROWS = LANES + 8          # column-packed mu_w/rho_w (128 rows) + mu_b/rho_b block


def _bnn_kernel(num_layers, hidden_dim, x_ref, params_ref, eps_ref, out_ref, kl_ref):
    # x_ref:      (B_pad, 128)                  zero-padded input
    # params_ref: (num_layers*136 + 136, 128)   packed parameter slab
    # eps_ref:    (136, S_pad)                  rows 0..127 = eps_w (hidden in sublanes,
    #                                           samples in lanes); row 128 = eps_b
    # out_ref:    (B_pad, S_pad)                per-(row, sample) outputs
    # kl_ref:     (8, 128)                      KL scalar (read [0, 0] in wrapper)

    # ---- deterministic ReLU MLP, computed exactly once ----
    h = x_ref[...]                                          # (B_pad, 128) f32
    for i in range(num_layers):
        off = i * LAYER_ROWS
        w = params_ref[off:off + LANES, :]                  # (128, 128), zero-padded
        b = params_ref[off + LANES:off + LANES + 1, :]      # (1, 128) bias row
        h = jnp.maximum(
            jnp.dot(h, w, preferred_element_type=jnp.float32) + b, 0.0)
        # Padded lanes (>= hidden_dim) stay exactly 0 through every layer.

    # ---- Bayesian (reparameterized) output layer: all samples in one matmul ----
    bz = num_layers * LAYER_ROWS
    bw = params_ref[bz:bz + LANES, :]                       # (128,128): lane0=mu_w lane1=rho_w
    bb = params_ref[bz + LANES:bz + LANES + 8, :]           # (8,128): [0,0]=mu_b [0,1]=rho_b
    mu_w, rho_w = bw[:, 0:1], bw[:, 1:2]                    # (128, 1) columns
    mu_b, rho_b = bb[0:1, 0:1], bb[0:1, 1:2]                # (1, 1)

    def softplus(r):                                        # overflow-safe, EUP
        return jnp.where(r > 20.0, r, jnp.log1p(jnp.exp(jnp.minimum(r, 20.0))))

    sig_w = softplus(rho_w)                                 # (128, 1)
    sig_b = softplus(rho_b)                                 # (1, 1)

    eps_w = eps_ref[0:LANES, :]                             # (128, S_pad)
    eps_b = eps_ref[LANES:LANES + 1, :]                     # (1, S_pad)

    # All-sample weight tile (128, S_pad). Rows >= hidden_dim are 0 (mu_w pad = 0,
    # eps pad = 0) and h's lanes >= hidden_dim are 0, so no extra masking needed.
    w_all = mu_w + sig_w * eps_w
    bias_all = mu_b + sig_b * eps_b                         # (1, S_pad)

    out_ref[...] = (jnp.dot(h, w_all, preferred_element_type=jnp.float32)
                    + bias_all)                             # (B_pad, S_pad)

    # ---- KL( N(mu, sigma) || N(0, 1) ), computed once ----
    row = jax.lax.broadcasted_iota(jnp.int32, (LANES, 1), 0)
    kl_w_terms = -jnp.log(sig_w) + 0.5 * (sig_w * sig_w + mu_w * mu_w) - 0.5
    kl_w = jnp.sum(jnp.where(row < hidden_dim, kl_w_terms, 0.0),
                   axis=0, keepdims=True)                   # (1, 1)
    kl_b = -jnp.log(sig_b) + 0.5 * (sig_b * sig_b + mu_b * mu_b) - 0.5
    kl_ref[...] = jnp.broadcast_to(kl_w + kl_b, (8, LANES))


def _pack_params(params, d_in, hidden_dim):
    """Pack all parameters into one lane-dense (R, 128) f32 slab (single DMA)."""
    rows = []
    fan_in = d_in
    for W, b in params["layers"]:
        wp = jnp.zeros((LANES, LANES), jnp.float32).at[:fan_in, :hidden_dim].set(
            W.astype(jnp.float32))
        bp = jnp.zeros((8, LANES), jnp.float32).at[0, :hidden_dim].set(
            b.reshape(-1).astype(jnp.float32))
        rows += [wp, bp]
        fan_in = hidden_dim
    # Bayesian layer: mu_w / rho_w column-packed (hidden along sublanes) so the
    # kernel can build the (128, S) all-sample weight tile without a transpose.
    bw = jnp.zeros((LANES, LANES), jnp.float32)
    bw = bw.at[:hidden_dim, 0].set(params["mu_w"][:, 0].astype(jnp.float32))
    bw = bw.at[:hidden_dim, 1].set(params["rho_w"][:, 0].astype(jnp.float32))
    bb = jnp.zeros((8, LANES), jnp.float32)
    bb = bb.at[0, 0].set(params["mu_b"].reshape(-1)[0].astype(jnp.float32))
    bb = bb.at[0, 1].set(params["rho_b"].reshape(-1)[0].astype(jnp.float32))
    rows += [bw, bb]
    return jnp.concatenate(rows, axis=0)   # (num_layers*136 + 136, 128)


def bnn_apply(x, params, eps_w, eps_b):
    """Fused BNN forward for S MC samples in ONE kernel invocation.

    x: (B, d_in); eps_w: (S, hidden, 1); eps_b: (S, 1, 1).
    Returns (outputs (S, B, 1), kl scalar).
    """
    num_layers = len(params["layers"])
    hidden_dim, out_dim = params["mu_w"].shape
    assert out_dim == 1, "kernel packs samples (not output features) along lanes"
    # TODO(synk): output_dim > 1 would need a (hidden, out*S) packed weight tile.
    B, d_in = x.shape
    S = eps_w.shape[0]
    assert d_in <= LANES and hidden_dim <= LANES
    b_pad = max(8, ((B + 7) // 8) * 8)
    s_pad = ((S + LANES - 1) // LANES) * LANES

    x_p = jnp.zeros((b_pad, LANES), jnp.float32).at[:B, :d_in].set(
        x.astype(jnp.float32))
    slab = _pack_params(params, d_in, hidden_dim)
    eps_slab = jnp.zeros((LANES + 8, s_pad), jnp.float32)
    eps_slab = eps_slab.at[:hidden_dim, :S].set(eps_w[:, :, 0].astype(jnp.float32).T)
    eps_slab = eps_slab.at[LANES, :S].set(eps_b.reshape(S).astype(jnp.float32))

    kernel = functools.partial(_bnn_kernel, num_layers, hidden_dim)

    out_slab, kl_slab = pl.pallas_call(
        kernel,
        out_shape=(jax.ShapeDtypeStruct((b_pad, s_pad), jnp.float32),
                   jax.ShapeDtypeStruct((8, LANES), jnp.float32)),
        in_specs=[pl.BlockSpec(memory_space=pltpu.MemorySpace.VMEM),   # x
                  pl.BlockSpec(memory_space=pltpu.MemorySpace.VMEM),   # params slab
                  pl.BlockSpec(memory_space=pltpu.MemorySpace.VMEM)],  # eps slab
        out_specs=(pl.BlockSpec(memory_space=pltpu.MemorySpace.VMEM),
                   pl.BlockSpec(memory_space=pltpu.MemorySpace.VMEM)),
    )(x_p, slab, eps_slab)

    outputs = out_slab[:B, :S].T[:, :, None]                # (S, B, 1)
    kl = kl_slab[0, 0]                                      # scalar
    return outputs, kl


def bnn_forward(x, params, eps_w, eps_b):
    """Single-sample forward: returns (output (B, 1), kl scalar)."""
    out, kl = bnn_apply(x, params, eps_w[None], eps_b[None])
    return out[0], kl


def bnn_predict(x, params, key, samples=10):
    """Mirror of BNN.predict: MC mean / variance over `samples` draws.

    Note: matches torch.var's unbiased default (ddof=1); samples must be > 1.
    """
    hidden_dim, out_dim = params["mu_w"].shape
    kw, kb = jax.random.split(key)
    eps_w = jax.random.normal(kw, (samples, hidden_dim, out_dim), jnp.float32)
    eps_b = jax.random.normal(kb, (samples, 1, out_dim), jnp.float32)
    preds, _ = bnn_apply(x, params, eps_w, eps_b)
    return preds.mean(axis=0), jnp.var(preds, axis=0, ddof=1)


def bnn_reference(x, params, eps_w, eps_b):
    """Pure-JAX reference for correctness checking."""
    hp = jax.lax.Precision.HIGHEST
    h = x.astype(jnp.float32)
    for W, b in params["layers"]:
        h = jnp.maximum(jnp.dot(h, W, precision=hp) + b, 0.0)
    sig_w = jax.nn.softplus(params["rho_w"])
    sig_b = jax.nn.softplus(params["rho_b"])
    w = params["mu_w"] + sig_w * eps_w
    bias = params["mu_b"] + sig_b * eps_b
    out = jnp.dot(h, w, precision=hp) + bias
    kl = (jnp.sum(-jnp.log(sig_w) + 0.5 * (sig_w ** 2 + params["mu_w"] ** 2) - 0.5)
          + jnp.sum(-jnp.log(sig_b) + 0.5 * (sig_b ** 2 + params["mu_b"] ** 2) - 0.5))
    return out, kl


def init_params(key, in_dim, hidden_dim, num_layers, output_dim):
    """Deterministic synthetic init mirroring the PyTorch module's shapes."""
    keys = jax.random.split(key, 2 * num_layers + 4)
    layers = []
    fan_in = in_dim
    for i in range(num_layers):
        bound = 1.0 / jnp.sqrt(fan_in)
        W = jax.random.uniform(keys[2 * i], (fan_in, hidden_dim),
                               minval=-bound, maxval=bound, dtype=jnp.float32)
        b = jax.random.uniform(keys[2 * i + 1], (1, hidden_dim),
                               minval=-bound, maxval=bound, dtype=jnp.float32)
        layers.append((W, b))
        fan_in = hidden_dim

    # bayesian_torch defaults: mu ~ N(0, 0.1), rho ~ N(-3, 0.1)
    mu_w = 0.1 * jax.random.normal(keys[-4], (hidden_dim, output_dim), dtype=jnp.float32)
    rho_w = -3.0 + 0.1 * jax.random.normal(keys[-3], (hidden_dim, output_dim), dtype=jnp.float32)
    mu_b = 0.1 * jax.random.normal(keys[-2], (1, output_dim), dtype=jnp.float32)
    rho_b = -3.0 + 0.1 * jax.random.normal(keys[-1], (1, output_dim), dtype=jnp.float32)

    return {"layers": layers, "mu_w": mu_w, "rho_w": rho_w,
            "mu_b": mu_b, "rho_b": rho_b}


if __name__ == "__main__":
    # BNN(hidden_dim=32, num_layers=2, output_dim=1) on a [batch=8, features=16] input.
    B, D_IN, HIDDEN, NUM_LAYERS, OUT = 8, 16, 32, 2, 1

    root = jax.random.PRNGKey(0)
    k_param, k_x, k_epsw, k_epsb, k_pred = jax.random.split(root, 5)

    params = init_params(k_param, D_IN, HIDDEN, NUM_LAYERS, OUT)
    x = jax.random.normal(k_x, (B, D_IN), dtype=jnp.float32)

    # One forward-pass reparameterization sample (deterministic noise).
    eps_w = jax.random.normal(k_epsw, (HIDDEN, OUT), dtype=jnp.float32)
    eps_b = jax.random.normal(k_epsb, (1, OUT), dtype=jnp.float32)

    out, kl = bnn_forward(x, params, eps_w, eps_b)
    jax.block_until_ready((out, kl))
    assert out.shape == (B, OUT) and out.dtype == jnp.float32
    assert kl.shape == () and bool(jnp.isfinite(kl))

    # Correctness vs pure-JAX reference.
    ref_out, ref_kl = bnn_reference(x, params, eps_w, eps_b)
    assert bool(jnp.allclose(out, ref_out, rtol=1e-4, atol=1e-4)), "output mismatch"
    assert bool(jnp.allclose(kl, ref_kl, rtol=1e-4, atol=1e-4)), "kl mismatch"

    # Multi-sample path: all samples fused in one kernel call, checked per sample.
    S = 4
    eps_w_s = jax.random.normal(jax.random.fold_in(root, 1), (S, HIDDEN, OUT), jnp.float32)
    eps_b_s = jax.random.normal(jax.random.fold_in(root, 2), (S, 1, OUT), jnp.float32)
    outs, kl_s = bnn_apply(x, params, eps_w_s, eps_b_s)
    jax.block_until_ready((outs, kl_s))
    assert outs.shape == (S, B, OUT)
    for s in range(S):
        r_o, _ = bnn_reference(x, params, eps_w_s[s], eps_b_s[s])
        assert bool(jnp.allclose(outs[s], r_o, rtol=1e-4, atol=1e-4)), f"sample {s} mismatch"
    assert bool(jnp.allclose(kl_s, ref_kl, rtol=1e-4, atol=1e-4)), "multi-sample kl mismatch"

    # Predict path (mean / unbiased variance over MC samples).
    mean, var = bnn_predict(x, params, k_pred, samples=8)
    jax.block_until_ready((mean, var))
    assert mean.shape == (B, OUT) and var.shape == (B, OUT)
    assert bool(jnp.all(jnp.isfinite(mean))) and bool(jnp.all(jnp.isfinite(var)))

    print("KERNEL_OK")
</pallas_src>

<mosaic_0001>
module attributes {stable_mosaic.version = 11 : i64} {
  func.func @_bnn_kernel(%arg0: memref<8x128xf32, #tpu.memory_space<vmem>>, %arg1: memref<408x128xf32, #tpu.memory_space<vmem>>, %arg2: memref<136x128xf32, #tpu.memory_space<vmem>>, %arg3: memref<8x128xf32, #tpu.memory_space<vmem>>, %arg4: memref<8x128xf32, #tpu.memory_space<vmem>>) attributes {dimension_semantics = [], scalar_prefetch = 0 : i64, scratch_operands = 0 : i64, tpu.core_type = #tpu.core_type<tc>} {
    %c0 = arith.constant 0 : index
    %c0_0 = arith.constant 0 : index
    %0 = vector.load %arg0[%c0, %c0_0] : memref<8x128xf32, #tpu.memory_space<vmem>>, vector<8x128xf32>
    %c0_1 = arith.constant 0 : index
    %c0_2 = arith.constant 0 : index
    %1 = vector.load %arg1[%c0_1, %c0_2] : memref<408x128xf32, #tpu.memory_space<vmem>>, vector<128x128xf32>
    %c128 = arith.constant 128 : index
    %c0_3 = arith.constant 0 : index
    %2 = vector.load %arg1[%c128, %c0_3] : memref<408x128xf32, #tpu.memory_space<vmem>>, vector<1x128xf32>
    %cst = arith.constant dense<0.000000e+00> : vector<8x128xf32>
    %3 = tpu.matmul %0, %1, %cst {dimension_numbers = #tpu.dot_dimension_numbers<[1], [0], [0], [1], [0, 0, 1, 1], [], []>} : vector<8x128xf32>, vector<128x128xf32>, vector<8x128xf32> -> vector<8x128xf32>
    %4 = vector.broadcast %2 : vector<1x128xf32> to vector<8x128xf32>
    %5 = arith.addf %3, %4 : vector<8x128xf32>
    %cst_4 = arith.constant 0.000000e+00 : f32
    %6 = vector.broadcast %cst_4 : f32 to vector<8x128xf32>
    %7 = arith.maximumf %5, %6 : vector<8x128xf32>
    %c136 = arith.constant 136 : index
    %c0_5 = arith.constant 0 : index
    %8 = vector.load %arg1[%c136, %c0_5] : memref<408x128xf32, #tpu.memory_space<vmem>>, vector<128x128xf32>
    %c264 = arith.constant 264 : index
    %c0_6 = arith.constant 0 : index
    %9 = vector.load %arg1[%c264, %c0_6] : memref<408x128xf32, #tpu.memory_space<vmem>>, vector<1x128xf32>
    %cst_7 = arith.constant dense<0.000000e+00> : vector<8x128xf32>
    %10 = tpu.matmul %7, %8, %cst_7 {dimension_numbers = #tpu.dot_dimension_numbers<[1], [0], [0], [1], [0, 0, 1, 1], [], []>} : vector<8x128xf32>, vector<128x128xf32>, vector<8x128xf32> -> vector<8x128xf32>
    %11 = vector.broadcast %9 : vector<1x128xf32> to vector<8x128xf32>
    %12 = arith.addf %10, %11 : vector<8x128xf32>
    %cst_8 = arith.constant 0.000000e+00 : f32
    %13 = vector.broadcast %cst_8 : f32 to vector<8x128xf32>
    %14 = arith.maximumf %12, %13 : vector<8x128xf32>
    %c272 = arith.constant 272 : index
    %c0_9 = arith.constant 0 : index
    %15 = vector.load %arg1[%c272, %c0_9] : memref<408x128xf32, #tpu.memory_space<vmem>>, vector<128x128xf32>
    %c400 = arith.constant 400 : index
    %c0_10 = arith.constant 0 : index
    %16 = vector.load %arg1[%c400, %c0_10] : memref<408x128xf32, #tpu.memory_space<vmem>>, vector<8x128xf32>
    %17 = vector.extract_strided_slice %15 {offsets = [0, 0], sizes = [128, 1], strides = [1, 1]} : vector<128x128xf32> to vector<128x1xf32>
    %18 = vector.extract_strided_slice %15 {offsets = [0, 1], sizes = [128, 1], strides = [1, 1]} : vector<128x128xf32> to vector<128x1xf32>
    %19 = vector.extract_strided_slice %16 {offsets = [0, 0], sizes = [1, 1], strides = [1, 1]} : vector<8x128xf32> to vector<1x1xf32>
    %20 = vector.extract_strided_slice %16 {offsets = [0, 1], sizes = [1, 1], strides = [1, 1]} : vector<8x128xf32> to vector<1x1xf32>
    %cst_11 = arith.constant 2.000000e+01 : f32
    %21 = vector.broadcast %cst_11 : f32 to vector<128x1xf32>
    %22 = arith.cmpf ogt, %18, %21 : vector<128x1xf32>
    %cst_12 = arith.constant 2.000000e+01 : f32
    %23 = vector.broadcast %cst_12 : f32 to vector<128x1xf32>
    %24 = arith.minimumf %18, %23 : vector<128x1xf32>
    %25 = math.exp %24 : vector<128x1xf32>
    %26 = math.log1p %25 : vector<128x1xf32>
    %27 = arith.select %22, %18, %26 : vector<128x1xi1>, vector<128x1xf32>
    %cst_13 = arith.constant 2.000000e+01 : f32
    %28 = vector.broadcast %cst_13 : f32 to vector<1x1xf32>
    %29 = arith.cmpf ogt, %20, %28 : vector<1x1xf32>
    %cst_14 = arith.constant 2.000000e+01 : f32
    %30 = vector.broadcast %cst_14 : f32 to vector<1x1xf32>
    %31 = arith.minimumf %20, %30 : vector<1x1xf32>
    %32 = math.exp %31 : vector<1x1xf32>
    %33 = math.log1p %32 : vector<1x1xf32>
    %34 = arith.select %29, %20, %33 : vector<1x1xi1>, vector<1x1xf32>
    %c0_15 = arith.constant 0 : index
    %c0_16 = arith.constant 0 : index
    %35 = vector.load %arg2[%c0_15, %c0_16] : memref<136x128xf32, #tpu.memory_space<vmem>>, vector<128x128xf32>
    %c128_17 = arith.constant 128 : index
    %c0_18 = arith.constant 0 : index
    %36 = vector.load %arg2[%c128_17, %c0_18] : memref<136x128xf32, #tpu.memory_space<vmem>>, vector<1x128xf32>
    %37 = vector.broadcast %27 : vector<128x1xf32> to vector<128x128xf32>
    %38 = arith.mulf %37, %35 : vector<128x128xf32>
    %39 = vector.broadcast %17 : vector<128x1xf32> to vector<128x128xf32>
    %40 = arith.addf %39, %38 : vector<128x128xf32>
    %41 = vector.broadcast %34 : vector<1x1xf32> to vector<1x128xf32>
    %42 = arith.mulf %41, %36 : vector<1x128xf32>
    %43 = vector.broadcast %19 : vector<1x1xf32> to vector<1x128xf32>
    %44 = arith.addf %43, %42 : vector<1x128xf32>
    %cst_19 = arith.constant dense<0.000000e+00> : vector<8x128xf32>
    %45 = tpu.matmul %14, %40, %cst_19 {dimension_numbers = #tpu.dot_dimension_numbers<[1], [0], [0], [1], [0, 0, 1, 1], [], []>} : vector<8x128xf32>, vector<128x128xf32>, vector<8x128xf32> -> vector<8x128xf32>
    %46 = vector.broadcast %44 : vector<1x128xf32> to vector<8x128xf32>
    %47 = arith.addf %45, %46 : vector<8x128xf32>
    %c0_20 = arith.constant 0 : index
    %c0_21 = arith.constant 0 : index
    %48 = vector.load %arg3[%c0_20, %c0_21] : memref<8x128xf32, #tpu.memory_space<vmem>>, vector<8x128xf32>
    tpu.vector_store %arg3[%c0_20, %c0_21], %47 {strides = array<i32>} : memref<8x128xf32, #tpu.memory_space<vmem>>, vector<8x128xf32>,
    %49 = tpu.iota {dimensions = array<i32: 0>} : vector<128x1xi32>
    %50 = math.log %27 : vector<128x1xf32>
    %cst_22 = arith.constant 0.000000e+00 : f32
    %51 = vector.broadcast %cst_22 : f32 to vector<128x1xf32>
    %52 = arith.subf %51, %50 : vector<128x1xf32>
    %53 = arith.mulf %27, %27 : vector<128x1xf32>
    %54 = arith.mulf %17, %17 : vector<128x1xf32>
    %55 = arith.addf %53, %54 : vector<128x1xf32>
    %cst_23 = arith.constant 5.000000e-01 : f32
    %56 = vector.broadcast %cst_23 : f32 to vector<128x1xf32>
    %57 = arith.mulf %56, %55 : vector<128x1xf32>
    %58 = arith.addf %52, %57 : vector<128x1xf32>
    %cst_24 = arith.constant 5.000000e-01 : f32
    %59 = vector.broadcast %cst_24 : f32 to vector<128x1xf32>
    %60 = arith.subf %58, %59 : vector<128x1xf32>
    %c32_i32 = arith.constant 32 : i32
    %61 = vector.broadcast %c32_i32 : i32 to vector<128x1xi32>
    %62 = arith.cmpi slt, %49, %61 : vector<128x1xi32>
    %cst_25 = arith.constant 0.000000e+00 : f32
    %63 = vector.broadcast %cst_25 : f32 to vector<128x1xf32>
    %64 = arith.select %62, %60, %63 : vector<128x1xi1>, vector<128x1xf32>
    %cst_26 = arith.constant dense<0.000000e+00> : vector<1xf32>
    %65 = vector.multi_reduction <add>, %64, %cst_26 [0] : vector<128x1xf32> to vector<1xf32>
    %66 = vector.shape_cast %65 : vector<1xf32> to vector<1x1xf32>
    %67 = math.log %34 : vector<1x1xf32>
    %cst_27 = arith.constant 0.000000e+00 : f32
    %68 = vector.broadcast %cst_27 : f32 to vector<1x1xf32>
    %69 = arith.subf %68, %67 : vector<1x1xf32>
    %70 = arith.mulf %34, %34 : vector<1x1xf32>
    %71 = arith.mulf %19, %19 : vector<1x1xf32>
    %72 = arith.addf %70, %71 : vector<1x1xf32>
    %cst_28 = arith.constant 5.000000e-01 : f32
    %73 = vector.broadcast %cst_28 : f32 to vector<1x1xf32>
    %74 = arith.mulf %73, %72 : vector<1x1xf32>
    %75 = arith.addf %69, %74 : vector<1x1xf32>
    %cst_29 = arith.constant 5.000000e-01 : f32
    %76 = vector.broadcast %cst_29 : f32 to vector<1x1xf32>
    %77 = arith.subf %75, %76 : vector<1x1xf32>
    %78 = arith.addf %66, %77 : vector<1x1xf32>
    %79 = vector.shape_cast %78 : vector<1x1xf32> to vector<1x1xf32>
    %80 = vector.broadcast %79 : vector<1x1xf32> to vector<8x128xf32>
    %c0_30 = arith.constant 0 : index
    %c0_31 = arith.constant 0 : index
    %81 = vector.load %arg4[%c0_30, %c0_31] : memref<8x128xf32, #tpu.memory_space<vmem>>, vector<8x128xf32>
    tpu.vector_store %arg4[%c0_30, %c0_31], %80 {strides = array<i32>} : memref<8x128xf32, #tpu.memory_space<vmem>>, vector<8x128xf32>,
    return
  }
}

</mosaic_0001>

<bundles_post_ra>
// kernel: tpu_custom_call.1
= control target key start
LH: loop header
LB: loop body
LE: loop exit
PB: predicated region body
PF: predicated region fallthrough
CT: control target
= control target key end

     0   :  { %10 = vsyncpa [#allocation3], 0  ;;  %s2096_s0 = inlined_call_operand.hbm [shape: f32[8,128], index: 0, kind: input, shape index: {}]   ;;  %s2097_s1 = inlined_call_operand.hbm [shape: f32[408,128], index: 1, kind: input, shape index: {}]   ;;  %s2098_s2 = inlined_call_operand.hbm [shape: f32[136,128], index: 2, kind: input, shape index: {}]   ;;  %s2099_s3 = inlined_call_operand.hbm [shape: f32[8,128], index: 3, kind: output, shape index: {0}]   ;;  %s2100_s4 = inlined_call_operand.hbm [shape: f32[8,128], index: 4, kind: output, shape index: {1}]  }
   0x1   :  { %11 = vsyncpa [#allocation6], 0 }
   0x2   :  { %12 = vsyncpa [#allocation4], 0 }
   0x3   :  { %13 = vsyncpa [#allocation10], 0  ;;  %s1611_s15 = smov [#allocation5]   ;;  %s1493_s19 = scalar_lea.hbm %s2097_s1, 6528 }
   0x4   :  { %s29_s16 = sshll.u32 %s1611_s15, 4  ;;  %p1494_p0 = scmp.ne.s32.totalorder %s2097_s1, %s1493_s19  ;;  %s30_s16 = int_to_ptr.vmem [resolvable:$true] %s29_s16 }
   0x5   :  { %p1497_p1 = scmp.lt.u32.totalorder %s1493_s19, %s2097_s1 }
   0x7   :  { %p1499_p2 = pnand %p1497_p1, %p1494_p0 }
   0x9   :  { %1502 = shalt.err (!%p1499_p2)
}
   0xa   :  { %s1503_s24 = scalar_lea.vmem %s30_s16, 6528  ;;  %p1508_p4 = scmp.lt.s32.totalorder %s30_s16, %s30_s16 }
   0xb   :  { %p1504_p3 = scmp.ne.s32.totalorder %s30_s16, %s1503_s24  ;;  %p1509_p5 = scmp.lt.s32.totalorder %s1503_s24, %s1503_s24 }
   0xd   :  { %p1510_p6 = por %p1509_p5, %p1508_p4 }
   0xf   :  { %p1511_p7 = pnand %p1510_p6, %p1504_p3 }
  0x11   :  { %1514 = shalt.err (!%p1511_p7)
}
  0x12   :  { %s1612_s25 = smov 128   ;;  %s1613_s26 = smov 8  }
  0x13   :  { %35 = dma.hbm_to_vmem [thread:$0]  %s2097_s1, 6528, %s30_s16, [#allocation6], %s1612_s25, %s1612_s25, %s1613_s26  }
  0x14   :  { %s1614_s29 = smov [#allocation2]   ;;  %s1615_s5 = smov [#allocation7]  }
  0x15   :  { %s20_s30 = sshll.u32 %s1614_s29, 4  ;;  %s41_s6 = sshll.u32 %s1615_s5, 4  ;;  %s21_s30 = int_to_ptr.vmem [resolvable:$true] %s20_s30  ;;  %s42_s6 = int_to_ptr.vmem [resolvable:$true] %s41_s6 }
  0x16   :  { %s1515_s9 = scalar_lea.hbm %s2096_s0, 128 }
  0x17   :  { %p1516_p8 = scmp.ne.s32.totalorder %s2096_s0, %s1515_s9  ;;  %p1519_p9 = scmp.lt.u32.totalorder %s1515_s9, %s2096_s0 }
  0x19   :  { %p1521_p10 = pnand %p1519_p9, %p1516_p8 }
  0x1b   :  { %1524 = shalt.err (!%p1521_p10)
}
  0x1c   :  { %s1525_s1 = scalar_lea.vmem %s21_s30, 128  ;;  %p1530_p12 = scmp.lt.s32.totalorder %s21_s30, %s21_s30 }
  0x1d   :  { %p1526_p11 = scmp.ne.s32.totalorder %s21_s30, %s1525_s1  ;;  %p1531_p13 = scmp.lt.s32.totalorder %s1525_s1, %s1525_s1 }
  0x1f   :  { %p1532_p0 = por %p1531_p13, %p1530_p12 }
  0x21   :  { %p1533_p1 = pnand %p1532_p0, %p1526_p11 }
  0x23   :  { %1536 = shalt.err (!%p1533_p1)
}
  0x24   :  { %23 = dma.hbm_to_vmem [thread:$0]  %s2096_s0, 128, %s21_s30, [#allocation3]  }
  0x25   :  { %s1537_s18 = scalar_lea.hbm %s2098_s2, 2176 }
  0x26   :  { %p1538_p2 = scmp.ne.s32.totalorder %s2098_s2, %s1537_s18  ;;  %p1541_p3 = scmp.lt.u32.totalorder %s1537_s18, %s2098_s2 }
  0x28   :  { %p1543_p4 = pnand %p1541_p3, %p1538_p2 }
  0x2a   :  { %1546 = shalt.err (!%p1543_p4)
}
  0x2b   :  { %s1547_s23 = scalar_lea.vmem %s42_s6, 2176  ;;  %p1552_p6 = scmp.lt.s32.totalorder %s42_s6, %s42_s6 }
  0x2c   :  { %p1548_p5 = scmp.ne.s32.totalorder %s42_s6, %s1547_s23  ;;  %p1553_p7 = scmp.lt.s32.totalorder %s1547_s23, %s1547_s23 }
  0x2e   :  { %p1554_p8 = por %p1553_p7, %p1552_p6 }
  0x30   :  { %p1555_p9 = pnand %p1554_p8, %p1548_p5 }
  0x32   :  { %1558 = shalt.err (!%p1555_p9)
}
  0x33   :  { %47 = dma.hbm_to_vmem [thread:$0]  %s2098_s2, 2176, %s42_s6, [#allocation6], %s1612_s25, %s1612_s25, %s1613_s26  }
  0x34   :  { %1603 = dma.done.wait [#allocation3], 128  }
  0x35   :  { %1604 = vsyncadd [#allocation3], 4294967168 }
  0x36   :  { %1605 = dma.done.wait [#allocation6], 8704  }
  0x37   :  { %1606 = vsyncadd [#allocation6], 4294958592  ;;  %v1616_v0 = vmov 0.0|0.0   ;;  %vm1617_vm0 = vmmov 0   ;;  %v1618_v1 = vmov 0.0   ;;  %v1619_v2 = vmov 0  }
  0x38   :  { %1314 = vmatprep.subr.bf16.mxu0 %v1616_v0  ;;  %1241 = vmatprep.mubr.msk.f32.mxu0 %vm1617_vm0, %v1618_v1  ;;  %v58_v3 = vld [vmem:[#allocation5] sm:$0xff]  ;;  %v59_v4 = vld [vmem:[#allocation5 + $0x8] sm:$0xff]  ;;  %v60_v5 = vld [vmem:[#allocation5 + $0x10] sm:$0xff]  ;;  %v1620_v61 = vmov 1   ;;  %s1621_s2 = smov 1   ;;  %s1622_s25 = smov 127  }
  0x39   :  { %1402 = vset.pattern.permute.xlu1 %v1619_v2  ;;  %1403 = vset.pattern.permute.xlu0 %v1619_v2  ;;  %v1315_v6 = vpack.c.bf16 %v59_v4, %v58_v3  ;;  %v61_v7 = vld [vmem:[#allocation5 + $0x18] sm:$0xff]  ;;  %v62_v9 = vld [vmem:[#allocation5 + $0x20] sm:$0xff]  ;;  %v63_v10 = vld [vmem:[#allocation5 + $0x28] sm:$0xff]  ;;  %s1623_s27 = smov [#allocation9]  }
  0x3a   :  { %1338 = vmatprep.subr.bf16.mxu1 %v1616_v0  ;;  %1276 = vmatprep.mubr.msk.f32.mxu1 %vm1617_vm0, %v1618_v1  ;;  %v1318_v8 = vpack.c.bf16 %v61_v7, %v60_v5  ;;  %v1701_v11 = vld [vmem:[#allocation5 + $0x110] sm:$0xff]  ;;  %v1705_v13 = vld [vmem:[#allocation5 + $0x118] sm:$0xff]  ;;  %v1707_v14 = vld [vmem:[#allocation5 + $0x128] sm:$0xff]  ;;  %v1321_v16 = vpack.c.bf16 %v63_v10, %v62_v9  ;;  %s1125_s28 = sshll.u32 %s1623_s27, 4  ;;  %s1126_s28 = int_to_ptr.vmem [resolvable:$true] %s1125_s28 }
  0x3b   :  { %1316 = vmatpush3.bf16.msra.mxu0 %v1315_v6  ;;  %612 = vperm.xlu1 %1402, %v1701_v11   ;;  %v275_v12 = vmin.f32 %v1701_v11, 20.0  ;;  %v1709_v15 = vld [vmem:[#allocation5 + $0x130] sm:$0xff]  ;;  %v276_v18 = vmin.f32 %v1705_v13, 20.0  ;;  %v278_v19 = vmin.f32 %v1707_v14, 20.0  ;;  %v1714_v21 = vld [vmem:[#allocation5 + $0x148] sm:$0xff]  ;;  %v65_v23 = vld [vmem:[#allocation5 + $0x38] sm:$0xff]  ;;  %p1564_p11 = scmp.lt.s32.totalorder %s1126_s28, %s1126_s28 }
  0x3c   :  { %1317 = vmatprep.subr.bf16.mxu0 %v1616_v0  ;;  %v64_v17 = vld [vmem:[#allocation5 + $0x30] sm:$0xff]  ;;  %v279_v20 = vmin.f32 %v1709_v15, 20.0  ;;  %v282_v25 = vmin.f32 %v1714_v21, 20.0  ;;  %v1721_v27 = vld [vmem:[#allocation5 + $0x120] sm:$0xff]  ;;  %v1725_v32 = vld [vmem:[#allocation5 + $0x138] sm:$0xff]  ;;  %vm259_vm1 = vcmp.gt.f32.partialorder %v1701_v11, 20.0 }
  0x3d   :  { %v1716_v22 = vld [vmem:[#allocation5 + $0x150] sm:$0xff]  ;;  %v291_v24 = vmul.f32 1.442695, %v275_v12  ;;  %v293_v28 = vmul.f32 1.442695, %v276_v18  ;;  %622 = vperm.xlu0 %1403, %v1721_v27   ;;  %v1324_v31 = vpack.c.bf16 %v65_v23, %v64_v17  ;;  %v277_v34 = vmin.f32 %v1721_v27, 20.0 }
  0x3e   :  { %v283_v26 = vmin.f32 %v1716_v22, 20.0  ;;  %v297_v29 = vmul.f32 1.442695, %v278_v19  ;;  %v299_v30 = vmul.f32 1.442695, %v279_v20  ;;  %v1728_v35 = vld [vmem:[#allocation5 + $0x140] sm:$0xff] }
  0x3f   :  { %1319 = vmatpush3.bf16.msra.mxu0 %v1318_v8  ;;  %1415 = vpow2.f32 %v291_v24  ;;  %617 = vperm.xlu1 %1402, %v1705_v13   ;;  %v305_v33 = vmul.f32 1.442695, %v282_v25  ;;  %v66_v36 = vld [vmem:[#allocation5 + $0x40] sm:$0xff]  ;;  %v67_v37 = vld [vmem:[#allocation5 + $0x48] sm:$0xff]  ;;  %v280_v38 = vmin.f32 %v1725_v32, 20.0  ;;  %v281_v41 = vmin.f32 %v1728_v35, 20.0 }
  0x40   :  { %1320 = vmatprep.subr.bf16.mxu0 %v1616_v0  ;;  %1417 = vpow2.f32 %v293_v28  ;;  %v307_v39 = vmul.f32 1.442695, %v283_v26  ;;  %v1732_v40 = vld [vmem:[#allocation5 + $0x168] sm:$0xff]  ;;  %v1736_v42 = vld [vmem:[#allocation5 + $0x160] sm:$0xff]  ;;  %v295_v43 = vmul.f32 1.442695, %v277_v34  ;;  %v1327_v44 = vpack.c.bf16 %v67_v37, %v66_v36 }
  0x41   :  { %1419 = vpow2.f32 %v297_v29  ;;  %642 = vperm.xlu0 %1403, %v1728_v35   ;;  %v286_v45 = vmin.f32 %v1732_v40, 20.0  ;;  %v68_v46 = vld [vmem:[#allocation5 + $0x50] sm:$0xff]  ;;  %v69_v47 = vld [vmem:[#allocation5 + $0x58] sm:$0xff]  ;;  %v301_v48 = vmul.f32 1.442695, %v280_v38  ;;  %v285_v49 = vmin.f32 %v1736_v42, 20.0 }
  0x42   :  { %1421 = vpow2.f32 %v299_v30  ;;  %v1742_v50 = vld [vmem:[#allocation5 + $0x158] sm:$0xff]  ;;  %v303_v51 = vmul.f32 1.442695, %v281_v41  ;;  %v1330_v53 = vpack.c.bf16 %v69_v47, %v68_v46  ;;  %v70_v54 = vld [vmem:[#allocation5 + $0x60] sm:$0xff]  ;;  %v71_v55 = vld [vmem:[#allocation5 + $0x68] sm:$0xff]  ;;  %vm262_vm2 = vcmp.gt.f32.partialorder %v1707_v14, 20.0 }
  0x43   :  { %1322 = vmatpush3.bf16.msra.mxu0 %v1321_v16  ;;  %627 = vperm.xlu1 %1402, %v1707_v14   ;;  %1423 = vpow2.f32 %v305_v33  ;;  %v313_v52 = vmul.f32 1.442695, %v286_v45  ;;  %v284_v56 = vmin.f32 %v1742_v50, 20.0  ;;  %v311_v58 = vmul.f32 1.442695, %v285_v49  ;;  %v1750_v59 = vld [vmem:[#allocation5 + $0x170] sm:$0xff] }
  0x44   :  { %1323 = vmatprep.subr.bf16.mxu0 %v1616_v0  ;;  %1425 = vpow2.f32 %v307_v39  ;;  %v1333_v3 = vpack.c.bf16 %v71_v55, %v70_v54  ;;  %v72_v4 = vld [vmem:[#allocation5 + $0x70] sm:$0xff]  ;;  %v73_v5 = vld [vmem:[#allocation5 + $0x78] sm:$0xff]  ;;  %v287_v9 = vmin.f32 %v1750_v59, 20.0  ;;  %vm263_vm3 = vcmp.gt.f32.partialorder %v1709_v15, 20.0  ;;  %s1559_s29 = scalar_lea.vmem %s1126_s28, 128 }
  0x45   :  { %662 = vperm.xlu0 %1403, %v1736_v42   ;;  %1427 = vpow2.f32 %v295_v43  ;;  %v309_v8 = vmul.f32 1.442695, %v284_v56  ;;  %v1336_v17 = vpack.c.bf16 %v73_v5, %v72_v4  ;;  %v57_v43 = vld [vmem:[#allocation2] sm:$0xff]  ;;  %vm260_vm7 = vcmp.gt.f32.partialorder %v1705_v13, 20.0  ;;  %p1560_p10 = scmp.ne.s32.totalorder %s1126_s28, %s1559_s29  ;;  %p1565_p12 = scmp.lt.s32.totalorder %s1559_s29, %s1559_s29 }
  0x46   :  { %1429 = vpow2.f32 %v301_v48  ;;  %v315_v26 = vmul.f32 1.442695, %v287_v9  ;;  %vm266_vm8 = vcmp.gt.f32.partialorder %v1714_v21, 20.0  ;;  %vm267_vm10 = vcmp.gt.f32.partialorder %v1716_v22, 20.0 }
  0x47   :  { %1325 = vmatpush3.bf16.msra.mxu0 %v1324_v31  ;;  %632 = vperm.xlu1 %1402, %v1709_v15   ;;  %1431 = vpow2.f32 %v303_v51  ;;  %vm261_vm13 = vcmp.gt.f32.partialorder %v1721_v27, 20.0  ;;  %vm264_vm15 = vcmp.gt.f32.partialorder %v1725_v32, 20.0  ;;  %p1566_p13 = por %p1565_p12, %p1564_p11 }
  0x48   :  { %1326 = vmatprep.subr.bf16.mxu0 %v1616_v0  ;;  %1433 = vpow2.f32 %v313_v52 }
  0x49   :  { %v1747_v57 = vpop.eup %1415  ;;  %1407 = vset.pattern.permute.xlu0 %v1620_v61  ;;  %p1567_p0 = pnand %p1566_p13, %p1560_p10 }
  0x4a   :  { %v1752_v60 = vpop.eup %1417  ;;  %v323_v62 = vadd.f32 1.0, %v1747_v57  ;;  %v326_v12 = vmul.f32 -0.5, %v1747_v57  ;;  %v329_v31 = vand.u32 2147483647, %v1747_v57 }
  0x4b   :  { %1328 = vmatpush3.bf16.msra.mxu0 %v1327_v44  ;;  %v1420_v63 = vpop.eup %1419  ;;  %637 = vperm.xlu1 %1402, %v1725_v32   ;;  %v332_v23 = vadd.f32 1.0, %v1752_v60  ;;  %v335_v38 = vmul.f32 -0.5, %v1752_v60  ;;  %v338_v39 = vand.u32 2147483647, %v1752_v60 }
  0x4c   :  { %1329 = vmatprep.subr.bf16.mxu0 %v1616_v0  ;;  %v1757_v6 = vpop.eup %1421  ;;  %v350_v7 = vadd.f32 1.0, %v1420_v63  ;;  %1435 = vlog2.f32 %v323_v62  ;;  %v353_v18 = vmul.f32 -0.5, %v1420_v63  ;;  %v356_v29 = vand.u32 2147483647, %v1420_v63 }
  0x4d   :  { %v359_v10 = vadd.f32 1.0, %v1757_v6  ;;  %1437 = vpow2.f32 %v311_v58  ;;  %v1763_v16 = vpop.eup %1423  ;;  %v362_v24 = vmul.f32 -0.5, %v1757_v6  ;;  %v327_v30 = vadd.f32 1.0, %v326_v12 }
  0x4e   :  { %1439 = vlog2.f32 %v350_v7  ;;  %v1765_v19 = vpop.eup %1425  ;;  %v386_v20 = vadd.f32 1.0, %v1763_v16  ;;  %v354_v33 = vadd.f32 1.0, %v353_v18  ;;  %v365_v34 = vand.u32 2147483647, %v1757_v6 }
  0x4f   :  { %1331 = vmatpush3.bf16.msra.mxu0 %v1330_v53  ;;  %647 = vperm.xlu1 %1402, %v1714_v21   ;;  %1441 = vlog2.f32 %v359_v10  ;;  %v395_v25 = vadd.f32 1.0, %v1765_v19  ;;  %v1773_v28 = vpop.eup %1427  ;;  %v389_v36 = vmul.f32 -0.5, %v1763_v16  ;;  %v363_v44 = vadd.f32 1.0, %v362_v24 }
  0x50   :  { %1332 = vmatprep.subr.bf16.mxu0 %v1616_v0  ;;  %1443 = vpow2.f32 %v309_v8  ;;  %v1780_v37 = vpop.eup %1429  ;;  %v392_v45 = vand.u32 2147483647, %v1763_v16  ;;  %v341_v46 = vadd.f32 1.0, %v1773_v28  ;;  %vm1792_vm4 = vcmp.lt.f32.partialorder %v356_v29, 0.0004427343 }
  0x51   :  { %1445 = vlog2.f32 %v386_v20  ;;  %v1786_v41 = vpop.eup %1431  ;;  %v398_v49 = vmul.f32 -0.5, %v1765_v19  ;;  %v328_v51 = vmul.f32 %v1747_v57, %v327_v30  ;;  %vm1798_vm5 = vcmp.lt.f32.partialorder %v329_v31, 0.0004427343 }
  0x52   :  { %1447 = vlog2.f32 %v395_v25  ;;  %v1790_v47 = vpop.eup %1433  ;;  %v355_v54 = vmul.f32 %v1420_v63, %v354_v33  ;;  %vm1803_vm6 = vcmp.lt.f32.partialorder %v365_v34, 0.0004427343  ;;  %v390_v56 = vadd.f32 1.0, %v389_v36 }
  0x53   :  { %1334 = vmatpush3.bf16.msra.mxu0 %v1333_v3  ;;  %652 = vperm.xlu1 %1402, %v1716_v22   ;;  %1449 = vlog2.f32 %v332_v23  ;;  %v336_v62 = vadd.f32 1.0, %v335_v38  ;;  %v344_v3 = vmul.f32 -0.5, %v1773_v28  ;;  %v368_v63 = vadd.f32 1.0, %v1780_v37 }
  0x54   :  { %1335 = vmatprep.subr.bf16.mxu0 %v1616_v0  ;;  %1451 = vpow2.f32 %v315_v26  ;;  %v364_v5 = vmul.f32 %v1757_v6, %v363_v44  ;;  %vm1815_vm9 = vcmp.lt.f32.partialorder %v392_v45, 0.0004427343  ;;  %v401_v8 = vand.u32 2147483647, %v1765_v19  ;;  %v1858_v45 = vld [vmem:[#allocation5 + $0x178] sm:$0xff]  ;;  %v150_v44 = vld [vmem:[#allocation5 + $0x88] sm:$0xff] }
  0x55   :  { %1453 = vlog2.f32 %v341_v46  ;;  %v422_v9 = vadd.f32 1.0, %v1790_v47  ;;  %v391_v23 = vmul.f32 %v1763_v16, %v390_v56  ;;  %v337_v29 = vmul.f32 %v1752_v60, %v336_v62 }
  0x56   :  { %v1436_v53 = vpop.eup %1435  ;;  %1455 = vlog2.f32 %v368_v63  ;;  %v345_v30 = vadd.f32 1.0, %v344_v3  ;;  %v347_v16 = vand.u32 2147483647, %v1773_v28  ;;  %vm1849_vm11 = vcmp.lt.f32.partialorder %v401_v8, 0.0004427343 }
  0x57   :  { %1337 = vmatpush3.bf16.msra.mxu0 %v1336_v17  ;;  %v1808_v58 = vpop.eup %1437  ;;  %1404 = vset.pattern.permute.xlu1 %v1620_v61  ;;  %v325_v57 = vmul.f32 0.6931472, %v1436_v53  ;;  %v399_v17 = vadd.f32 1.0, %v398_v49  ;;  %1457 = vlog2.f32 %v422_v9  ;;  %vm1853_vm12 = vcmp.lt.f32.partialorder %v338_v39, 0.0004427343 }
  0x58   :  { %1362 = vmatprep.subr.bf16.mxu0 %v1616_v0  ;;  %v1440_v4 = vpop.eup %1439  ;;  %v346_v39 = vmul.f32 %v1773_v28, %v345_v30  ;;  %v374_v53 = vand.u32 2147483647, %v1780_v37  ;;  %vm1873_vm14 = vcmp.lt.f32.partialorder %v347_v16, 0.0004427343  ;;  %v288_v62 = vmin.f32 %v1858_v45, 20.0 }
  0x59   :  { %v1442_v10 = vpop.eup %1441  ;;  %v352_v12 = vmul.f32 0.6931472, %v1440_v4  ;;  %v331_v18 = vsel %vm1798_vm5, %v328_v51, %v325_v57  ;;  %v425_v57 = vmul.f32 -0.5, %v1790_v47  ;;  %v1884_v4 = vld [vmem:[#allocation5 + $0x188] sm:$0xff]  ;;  %v380_v9 = vmul.f32 -0.5, %v1786_v41 }
  0x5a   :  { %1242 = vmatmul.mubr.f32.vlgmr.msra.gmra.mrb[0].mxu0 %v57_v43  ;;  %v1825_v20 = vpop.eup %1443  ;;  %v361_v6 = vmul.f32 0.6931472, %v1442_v10  ;;  %v1832_v24 = vsel %vm259_vm1, %v1701_v11, %v331_v18  ;;  %v400_v43 = vmul.f32 %v1765_v19, %v399_v17 }
  0x5b   :  { %1311 = vmatprep.mubr.msk.f32.mxu0 %vm1617_vm0, %v1618_v1  ;;  %v371_v1 = vmul.f32 -0.5, %v1780_v37  ;;  %v1446_v25 = vpop.eup %1445  ;;  %v358_v26 = vsel %vm1792_vm4, %v355_v54, %v352_v12  ;;  %516 = vperm.xlu0 %1407, %v1832_v24   ;;  %v377_v54 = vadd.f32 1.0, %v1786_v41  ;;  %vm1897_vm0 = vcmp.lt.f32.partialorder %v374_v53, 0.0004427343  ;;  %v152_v53 = vld [vmem:[#allocation5 + $0x98] sm:$0xff] }
  0x5c   :  { %v1448_v31 = vpop.eup %1447  ;;  %v1843_v33 = vsel %vm262_vm2, %v1707_v14, %v358_v26  ;;  %v367_v34 = vsel %vm1803_vm6, %v364_v5, %v361_v6  ;;  %v388_v36 = vmul.f32 0.6931472, %v1446_v25  ;;  %v317_v6 = vmul.f32 1.442695, %v288_v62 }
  0x5d   :  { %v1450_v38 = vpop.eup %1449  ;;  %531 = vperm.xlu1 %1404, %v1843_v33   ;;  %v471_v48 = vsel %vm263_vm3, %v1709_v15, %v367_v34  ;;  %v397_v49 = vmul.f32 0.6931472, %v1448_v31  ;;  %v372_v51 = vadd.f32 1.0, %v371_v1  ;;  %1459 = vlog2.f32 %v377_v54  ;;  %v153_v54 = vld [vmem:[#allocation5 + $0xa0] sm:$0xff] }
  0x5e   :  { %v1860_v46 = vpop.eup %1451  ;;  %v334_v19 = vmul.f32 0.6931472, %v1450_v38  ;;  %v394_v52 = vsel %vm1815_vm9, %v391_v23, %v388_v36  ;;  %v290_v23 = vmin.f32 %v1884_v4, 20.0  ;;  %v426_v25 = vadd.f32 1.0, %v425_v57 }
  0x5f   :  { %v1454_v55 = vpop.eup %1453  ;;  %v431_v63 = vadd.f32 1.0, %v1860_v46  ;;  %v474_v5 = vsel %vm266_vm8, %v1714_v21, %v394_v52  ;;  %v403_v7 = vsel %vm1849_vm11, %v400_v43, %v397_v49  ;;  %v373_v8 = vmul.f32 %v1780_v37, %v372_v51 }
  0x60   :  { %v340_v56 = vsel %vm1853_vm12, %v337_v29, %v334_v19  ;;  %v343_v3 = vmul.f32 0.6931472, %v1454_v55  ;;  %v1456_v10 = vpop.eup %1455  ;;  %v404_v21 = vadd.f32 1.0, %v1825_v20  ;;  %v475_v1 = vsel %vm267_vm10, %v1716_v22, %v403_v7  ;;  %v1912_v29 = vld [vmem:[#allocation5 + $0x180] sm:$0xff] }
  0x61   :  { %536 = vperm.xlu1 %1404, %v471_v48   ;;  %v1881_v28 = vsel %vm260_vm7, %v1705_v13, %v340_v56  ;;  %v370_v37 = vmul.f32 0.6931472, %v1456_v10  ;;  %v428_v26 = vand.u32 2147483647, %v1790_v47  ;;  %1461 = vlog2.f32 %v431_v63  ;;  %v1458_v30 = vpop.eup %1457  ;;  %v151_v48 = vld [vmem:[#allocation5 + $0x90] sm:$0xff] }
  0x62   :  { %521 = vperm.xlu0 %1407, %v1881_v28   ;;  %v349_v12 = vsel %vm1873_vm14, %v346_v39, %v343_v3  ;;  %v381_v31 = vadd.f32 1.0, %v380_v9  ;;  %1463 = vlog2.f32 %v404_v21  ;;  %v413_v34 = vadd.f32 1.0, %v1808_v58  ;;  %v154_v9 = vld [vmem:[#allocation5 + $0xa8] sm:$0xff]  ;;  %v155_v10 = vld [vmem:[#allocation5 + $0xb0] sm:$0xff] }
  0x63   :  { %v1905_v18 = vsel %vm261_vm13, %v1721_v27, %v349_v12  ;;  %v376_v16 = vsel %vm1897_vm0, %v373_v8, %v370_v37  ;;  %v383_v36 = vand.u32 2147483647, %v1786_v41  ;;  %v407_v38 = vmul.f32 -0.5, %v1825_v20 }
  0x64   :  { %v472_v22 = vsel %vm264_vm15, %v1725_v32, %v376_v16  ;;  %1465 = vlog2.f32 %v413_v34  ;;  %v321_v43 = vmul.f32 1.442695, %v290_v23  ;;  %v289_v60 = vmin.f32 %v1912_v29, 20.0  ;;  %v157_v34 = vld [vmem:[#allocation5 + $0xc0] sm:$0xff] }
  0x65   :  { %551 = vperm.xlu1 %1404, %v474_v5   ;;  %v424_v49 = vmul.f32 0.6931472, %v1458_v30  ;;  %v427_v19 = vmul.f32 %v1790_v47, %v426_v25  ;;  %v416_v51 = vmul.f32 -0.5, %v1808_v58  ;;  %1467 = vpow2.f32 %v317_v6 }
  0x66   :  { %526 = vperm.xlu0 %1407, %v1905_v18   ;;  %vm1926_vm1 = vcmp.lt.f32.partialorder %v428_v26, 0.0004427343  ;;  %v382_v32 = vmul.f32 %v1786_v41, %v381_v31  ;;  %1469 = vpow2.f32 %v321_v43  ;;  %v319_v39 = vmul.f32 1.442695, %v289_v60  ;;  %v156_v31 = vld [vmem:[#allocation5 + $0xb8] sm:$0xff] }
  0x67   :  { %v1460_v55 = vpop.eup %1459  ;;  %v434_v56 = vmul.f32 -0.5, %v1860_v46  ;;  %vm1932_vm2 = vcmp.lt.f32.partialorder %v383_v36, 0.0004427343  ;;  %v408_v47 = vadd.f32 1.0, %v407_v38  ;;  %v1339_v15 = vpack.c.bf16 %v151_v48, %v150_v44 }
  0x68   :  { %vm265_vm3 = vcmp.gt.f32.partialorder %v1728_v35, 20.0  ;;  %v379_v62 = vmul.f32 0.6931472, %v1460_v55  ;;  %v410_v3 = vand.u32 2147483647, %v1825_v20  ;;  %1471 = vpow2.f32 %v319_v39  ;;  %v158_v39 = vld [vmem:[#allocation5 + $0xc8] sm:$0xff] }
  0x69   :  { %556 = vperm.xlu1 %1404, %v475_v1   ;;  %vm270_vm4 = vcmp.gt.f32.partialorder %v1732_v40, 20.0  ;;  %v430_v41 = vsel %vm1926_vm1, %v427_v19, %v424_v49  ;;  %v417_v63 = vadd.f32 1.0, %v416_v51  ;;  %1340 = vmatpush3.bf16.msra.mxu1 %v1339_v15  ;;  %v1342_v5 = vpack.c.bf16 %v153_v54, %v152_v53  ;;  %v160_v15 = vld [vmem:[#allocation5 + $0xd8] sm:$0xff] }
  0x6a   :  { %541 = vperm.xlu0 %1407, %v472_v22   ;;  %v385_v7 = vsel %vm1932_vm2, %v382_v32, %v379_v62  ;;  %v419_v8 = vand.u32 2147483647, %v1808_v58  ;;  %1341 = vmatprep.subr.bf16.mxu1 %v1616_v0  ;;  %v435_v17 = vadd.f32 1.0, %v434_v56  ;;  %v409_v37 = vmul.f32 %v1825_v20, %v408_v47  ;;  %v161_v62 = vld [vmem:[#allocation5 + $0xe0] sm:$0xff] }
  0x6b   :  { %v1462_v12 = vpop.eup %1461  ;;  %v473_v21 = vsel %vm265_vm3, %v1728_v35, %v385_v7  ;;  %v478_v23 = vsel %vm270_vm4, %v1732_v40, %v430_v41  ;;  %v437_v1 = vand.u32 2147483647, %v1860_v46  ;;  %vm1955_vm5 = vcmp.lt.f32.partialorder %v410_v3, 0.0004427343 }
  0x6c   :  { %v1464_v6 = vpop.eup %1463  ;;  %vm268_vm6 = vcmp.gt.f32.partialorder %v1742_v50, 20.0  ;;  %v418_v30 = vmul.f32 %v1808_v58, %v417_v63  ;;  %v1345_v35 = vpack.c.bf16 %v155_v10, %v154_v9  ;;  %vm269_vm7 = vcmp.gt.f32.partialorder %v1736_v42, 20.0  ;;  %v163_v9 = vld [vmem:[#allocation5 + $0xf0] sm:$0xff] }
  0x6d   :  { %1405 = vset.pattern.permute.xlu1 %v1619_v2  ;;  %v406_v26 = vmul.f32 0.6931472, %v1464_v6  ;;  %1343 = vmatpush3.bf16.msra.mxu1 %v1342_v5  ;;  %vm1963_vm8 = vcmp.lt.f32.partialorder %v419_v8, 0.0004427343  ;;  %v433_v36 = vmul.f32 0.6931472, %v1462_v12  ;;  %v436_v58 = vmul.f32 %v1860_v46, %v435_v17 }
  0x6e   :  { %657 = vperm.xlu1 %1405, %v1742_v50   ;;  %546 = vperm.xlu0 %1407, %v473_v21   ;;  %v1466_v20 = vpop.eup %1465  ;;  %vm1971_vm9 = vcmp.lt.f32.partialorder %v437_v1, 0.0004427343  ;;  %v1348_v46 = vpack.c.bf16 %v157_v34, %v156_v31  ;;  %vm271_vm10 = vcmp.gt.f32.partialorder %v1750_v59, 20.0  ;;  %v1354_v63 = vpack.c.bf16 %v161_v62, %v160_v15  ;;  %v162_v8 = vld [vmem:[#allocation5 + $0xe8] sm:$0xff]  ;;  %v497_v62 = vld [vmem:[#allocation7] sm:$0xff] }
  0x6f   :  { %1344 = vmatprep.subr.bf16.mxu1 %v1616_v0  ;;  %v1468_v22 = vpop.eup %1467  ;;  %v412_v38 = vsel %vm1955_vm5, %v409_v37, %v406_v26  ;;  %v415_v43 = vmul.f32 0.6931472, %v1466_v20  ;;  %v439_v53 = vsel %vm1971_vm9, %v436_v58, %v433_v36  ;;  %vm272_vm12 = vcmp.gt.f32.partialorder %v1858_v45, 20.0  ;;  %v499_v21 = vld [vmem:[#allocation7 + $0x10] sm:$0xff] }
  0x70   :  { %v1470_v60 = vpop.eup %1469  ;;  %v476_v48 = vsel %vm268_vm6, %v1742_v50, %v412_v38  ;;  %v440_v49 = vadd.f32 1.0, %v1468_v22  ;;  %v159_v50 = vld [vmem:[#allocation5 + $0xd0] sm:$0xff]  ;;  %v443_v54 = vmul.f32 -0.5, %v1468_v22  ;;  %v479_v57 = vsel %vm271_vm10, %v1750_v59, %v439_v53 }
  0x71   :  { %v421_v19 = vsel %vm1963_vm8, %v418_v30, %v415_v43  ;;  %v458_v51 = vadd.f32 1.0, %v1470_v60  ;;  %1346 = vmatpush3.bf16.msra.mxu1 %v1345_v35  ;;  %v461_v56 = vmul.f32 -0.5, %v1470_v60  ;;  %v446_v41 = vand.u32 2147483647, %v1468_v22 }
  0x72   :  { %1406 = vset.pattern.permute.xlu1 %v1620_v61  ;;  %561 = vperm.xlu0 %1407, %v476_v48   ;;  %v1472_v52 = vpop.eup %1471  ;;  %v477_v32 = vsel %vm269_vm7, %v1736_v42, %v421_v19  ;;  %1473 = vlog2.f32 %v440_v49  ;;  %v1351_v42 = vpack.c.bf16 %v159_v50, %v158_v39  ;;  %v444_v3 = vadd.f32 1.0, %v443_v54 }
  0x73   :  { %571 = vperm.xlu1 %1406, %v478_v23   ;;  %1347 = vmatprep.subr.bf16.mxu1 %v1616_v0  ;;  %1475 = vlog2.f32 %v458_v51  ;;  %v449_v55 = vadd.f32 1.0, %v1472_v52  ;;  %v452_v47 = vmul.f32 -0.5, %v1472_v52  ;;  %v464_v5 = vand.u32 2147483647, %v1470_v60 }
  0x74   :  { %v445_v10 = vmul.f32 %v1468_v22, %v444_v3  ;;  %v455_v12 = vand.u32 2147483647, %v1472_v52  ;;  %vm1995_vm11 = vcmp.lt.f32.partialorder %v446_v41, 0.0004427343  ;;  %v1357_v1 = vpack.c.bf16 %v163_v9, %v162_v8 }
  0x75   :  { %1477 = vlog2.f32 %v449_v55  ;;  %1349 = vmatpush3.bf16.msra.mxu1 %v1348_v46  ;;  %v453_v7 = vadd.f32 1.0, %v452_v47  ;;  %vm2002_vm13 = vcmp.lt.f32.partialorder %v464_v5, 0.0004427343  ;;  %vm273_vm15 = vcmp.gt.f32.partialorder %v1912_v29, 20.0  ;;  %v498_v5 = vld [vmem:[#allocation7 + $0x8] sm:$0xff] }
  0x76   :  { %566 = vperm.xlu0 %1407, %v477_v32   ;;  %1350 = vmatprep.subr.bf16.mxu1 %v1616_v0  ;;  %vm456_vm14 = vcmp.lt.f32.partialorder %v455_v12, 0.0004427343  ;;  %vm274_vm0 = vcmp.gt.f32.partialorder %v1884_v4, 20.0  ;;  %v875_v58 = vmul.f32 %v1705_v13, %v1705_v13  ;;  %v877_v38 = vmul.f32 %v1707_v14, %v1707_v14  ;;  %v165_v14 = vld [vmem:[#allocation5 + $0x100] sm:$0xff] }
  0x77   :  { %1408 = vset.pattern.permute.xlu1 %v1619_v2  ;;  %v454_v30 = vmul.f32 %v1472_v52, %v453_v7  ;;  %v876_v43 = vmul.f32 %v1721_v27, %v1721_v27  ;;  %vm1050_vm3 = vcmask 15368  }
  0x78   :  { %667 = vperm.xlu1 %1408, %v1732_v40   ;;  %v462_v40 = vadd.f32 1.0, %v461_v56 }
  0x79   :  { %1352 = vmatpush3.bf16.msra.mxu1 %v1351_v42 }
  0x7a   :  { %1353 = vmatprep.subr.bf16.mxu1 %v1616_v0  ;;  %v463_v23 = vmul.f32 %v1470_v60, %v462_v40 }
  0x7c   :  { %1409 = vset.pattern.permute.xlu1 %v1620_v61  ;;  %v1474_v17 = vpop.eup %1473 }
  0x7d   :  { %576 = vperm.xlu1 %1409, %v479_v57   ;;  %v1476_v37 = vpop.eup %1475  ;;  %v442_v6 = vmul.f32 0.6931472, %v1474_v17  ;;  %1355 = vmatpush3.bf16.msra.mxu1 %v1354_v63  ;;  %v500_v63 = vld [vmem:[#allocation7 + $0x18] sm:$0xff]  ;;  %v501_v17 = vld [vmem:[#allocation7 + $0x20] sm:$0xff] }
  0x7e   :  { %v460_v25 = vmul.f32 0.6931472, %v1476_v37  ;;  %1356 = vmatprep.subr.bf16.mxu1 %v1616_v0 }
  0x7f   :  { %v1478_v35 = vpop.eup %1477  ;;  %v448_v20 = vsel %vm1995_vm11, %v445_v10, %v442_v6 }
  0x80   :  { %v480_v16 = vsel %vm272_vm12, %v1858_v45, %v448_v20  ;;  %v451_v31 = vmul.f32 0.6931472, %v1478_v35  ;;  %v502_v35 = vld [vmem:[#allocation7 + $0x28] sm:$0xff] }
  0x81   :  { %1410 = vset.pattern.permute.xlu1 %v1619_v2  ;;  %581 = vperm.xlu0 %1407, %v480_v16  }
  0x82   :  { %672 = vperm.xlu1 %1410, %v1750_v59   ;;  %v466_v59 = vsel %vm2002_vm13, %v463_v23, %v460_v25  ;;  %1358 = vmatpush3.bf16.msra.mxu1 %v1357_v1  ;;  %v457_v34 = vsel %vm456_vm14, %v454_v30, %v451_v31  ;;  %v504_v31 = vld [vmem:[#allocation7 + $0x38] sm:$0xff] }
  0x83   :  { %1359 = vmatprep.subr.bf16.mxu1 %v1616_v0  ;;  %v481_v22 = vsel %vm273_vm15, %v1912_v29, %v457_v34  ;;  %v482_v36 = vsel %vm274_vm0, %v1884_v4, %v466_v59 }
  0x85   :  { %586 = vperm.xlu0 %1407, %v481_v22  }
  0x86   :  { %677 = vperm.xlu1 %1410, %v1858_v45   ;;  %v874_v45 = vmul.f32 %v1701_v11, %v1701_v11 }
  0x89   :  { %1412 = vset.pattern.permute.xlu0 %v1619_v2 }
  0x8a   :  { %1411 = vset.pattern.permute.xlu1 %v1620_v61  ;;  %682 = vperm.xlu0 %1412, %v1912_v29   ;;  %v2031_v29 = vld [vmem:[#allocation5 + $0x190] sm:$0xff] }
  0x8b   :  { %591 = vperm.xlu1 %1411, %v482_v36   ;;  %v484_v11 = vmin.f32 %v2031_v29, 20.0  ;;  %vm483_vm2 = vcmp.gt.f32.partialorder %v2031_v29, 20.0 }
  0x8d   :  { %v485_v13 = vmul.f32 1.442695, %v484_v11 }
  0x8e   :  { %908 = vrot.lane.b32.xlu0 %v875_v58, %s1621_s2 }
  0x8f   :  { %1413 = vset.pattern.permute.xlu1 %v1619_v2  ;;  %v1092_v2 = vmul.f32 %v2031_v29, %v2031_v29  ;;  %1479 = vpow2.f32 %v485_v13 }
  0x90   :  { %687 = vperm.xlu1 %1413, %v1884_v4   ;;  %v164_v4 = vld [vmem:[#allocation5 + $0xf8] sm:$0xff] }
  0x91   :  { %v1360_v60 = vpack.c.bf16 %v165_v14, %v164_v4 }
  0x92   :  { %912 = vrot.lane.b32.xlu0 %v877_v38, %s1621_s2 }
  0x93   :  { %1361 = vmatpush3.bf16.msra.mxu1 %v1360_v60 }
  0x94   :  { %906 = vrot.lane.b32.xlu1 %v874_v45, %s1621_s2 }
  0x95   :  { %1414 = vset.pattern.permute.xlu1 %v1620_v61 }
  0x98   :  { %910 = vrot.lane.b32.xlu1 %v876_v43, %s1621_s2  ;;  %v503_v43 = vld [vmem:[#allocation7 + $0x30] sm:$0xff] }
  0x99   :  { %v1480_v44 = vpop.eup %1479 }
  0x9a   :  { %v487_v27 = vadd.f32 1.0, %v1480_v44  ;;  %v490_v48 = vmul.f32 -0.5, %v1480_v44  ;;  %v493_v19 = vand.u32 2147483647, %v1480_v44 }
  0x9c   :  { %1094 = vrot.lane.b32.xlu1 %v1092_v2, %s1621_s2  ;;  %1481 = vlog2.f32 %v487_v27  ;;  %v491_v61 = vadd.f32 1.0, %v490_v48  ;;  %vm494_vm1 = vcmp.lt.f32.partialorder %v493_v19, 0.0004427343  ;;  %v505_v2 = vld [vmem:[#allocation7 + $0x40] sm:$0xff] }
  0x9d   :  { %1483 = vlog2.f32 %v1881_v28 }
  0x9e   :  { %v492_v46 = vmul.f32 %v1480_v44, %v491_v61  ;;  %v508_v44 = vld [vmem:[#allocation7 + $0x58] sm:$0xff]  ;;  %1485 = vlog2.f32 %v1832_v24 }
  0x9f   :  { %1487 = vlog2.f32 %v1843_v33 }
  0xa0   :  { %1489 = vlog2.f32 %v1905_v18 }
  0xa6   :  { %v1482_v52 = vpop.eup %1481 }
  0xa7   :  { %v489_v32 = vmul.f32 0.6931472, %v1482_v52 }
  0xa9   :  { %v495_v50 = vsel %vm494_vm1, %v492_v46, %v489_v32  ;;  %v507_v32 = vld [vmem:[#allocation7 + $0x50] sm:$0xff] }
  0xaa   :  { %v2039_v53 = vsel %vm483_vm2, %v2031_v29, %v495_v50 }
  0xab   :  { %708 = vperm.xlu1 %1414, %v2039_v53   ;;  %1491 = vlog2.f32 %v2039_v53 }
  0xba   :  { %v613_v49 = vpop.permute.xlu1 %612 }
  0xbc   :  { %v623_v55 = vpop.permute.xlu0 %622 }
  0xbe   :  { %v618_v51 = vpop.permute.xlu1 %617 }
  0xc0   :  { %v643_v42 = vpop.permute.xlu0 %642 }
  0xc2   :  { %v628_v39 = vpop.permute.xlu1 %627 }
  0xc4   :  { %v2042_v47 = vpop.permute.xlu0 %662 }
  0xc6   :  { %v633_v54 = vpop.permute.xlu1 %632 }
  0xca   :  { %v638_v56 = vpop.permute.xlu1 %637 }
  0xce   :  { %v648_v57 = vpop.permute.xlu1 %647 }
  0xd2   :  { %v653_v15 = vpop.permute.xlu1 %652 }
  0xda   :  { %v517_v3 = vpop.permute.xlu0 %516 }
  0xdb   :  { %v594_v40 = vmul.f32 %v517_v3, %v497_v62 }
  0xdc   :  { %v532_v41 = vpop.permute.xlu1 %531 }
  0xdd   :  { %v597_v9 = vmul.f32 %v532_v41, %v500_v63  ;;  %v690_v10 = vadd.f32 %v613_v49, %v594_v40  ;;  %v506_v49 = vld [vmem:[#allocation7 + $0x48] sm:$0xff] }
  0xde   :  { %v510_v63 = vld [vmem:[#allocation7 + $0x68] sm:$0xff] }
  0xdf   :  { %v693_v1 = vadd.f32 %v628_v39, %v597_v9 }
  0xe0   :  { %v537_v7 = vpop.permute.xlu1 %536 }
  0xe1   :  { %v522_v8 = vpop.permute.xlu0 %521  ;;  %v598_v25 = vmul.f32 %v537_v7, %v501_v17 }
  0xe2   :  { %v595_v12 = vmul.f32 %v522_v8, %v498_v5 }
  0xe3   :  { %v694_v34 = vadd.f32 %v633_v54, %v598_v25 }
  0xe4   :  { %v552_v37 = vpop.permute.xlu1 %551  ;;  %v691_v6 = vadd.f32 %v618_v51, %v595_v12 }
  0xe5   :  { %v527_v23 = vpop.permute.xlu0 %526  ;;  %v601_v58 = vmul.f32 %v552_v37, %v504_v31 }
  0xe6   :  { %v1363_v26 = vpack.c.bf16 %v691_v6, %v690_v10  ;;  %v596_v30 = vmul.f32 %v527_v23, %v499_v21  ;;  %v511_v10 = vld [vmem:[#allocation7 + $0x70] sm:$0xff]  ;;  %v512_v21 = vld [vmem:[#allocation7 + $0x78] sm:$0xff]  ;;  %v1484_v23 = vpop.eup %1483 }
  0xe7   :  { %v697_v4 = vadd.f32 %v648_v57, %v601_v58  ;;  %v1486_v25 = vpop.eup %1485 }
  0xe8   :  { %v557_v20 = vpop.permute.xlu1 %556  ;;  %v692_v16 = vadd.f32 %v623_v55, %v596_v30  ;;  %1364 = vmatpush3.bf16.msra.mxu0 %v1363_v26 }
  0xe9   :  { %v542_v59 = vpop.permute.xlu0 %541  ;;  %1365 = vmatprep.subr.bf16.mxu0 %v1616_v0  ;;  %v602_v60 = vmul.f32 %v557_v20, %v505_v2  ;;  %v859_v20 = vmul.f32 %v1881_v28, %v1881_v28  ;;  %v860_v28 = vmul.f32 %v1905_v18, %v1905_v18 }
  0xea   :  { %v1366_v22 = vpack.c.bf16 %v693_v1, %v692_v16  ;;  %v599_v36 = vmul.f32 %v542_v59, %v502_v35  ;;  %v813_v35 = vmul.f32 0.6931472, %v1484_v23  ;;  %v1488_v16 = vpop.eup %1487 }
  0xeb   :  { %v698_v51 = vadd.f32 %v653_v15, %v602_v60  ;;  %v509_v15 = vld [vmem:[#allocation7 + $0x60] sm:$0xff]  ;;  %v1490_v59 = vpop.eup %1489  ;;  %v817_v2 = vmul.f32 0.6931472, %v1488_v16 }
  0xec   :  { %v695_v45 = vadd.f32 %v638_v56, %v599_v36  ;;  %1367 = vmatpush3.bf16.msra.mxu0 %v1366_v22  ;;  %v811_v22 = vmul.f32 0.6931472, %v1486_v25  ;;  %v858_v36 = vmul.f32 %v1832_v24, %v1832_v24 }
  0xed   :  { %v658_v38 = vpop.permute.xlu1 %657  ;;  %1368 = vmatprep.subr.bf16.mxu0 %v1616_v0  ;;  %v547_v13 = vpop.permute.xlu0 %546 }
  0xee   :  { %v1369_v11 = vpack.c.bf16 %v695_v45, %v694_v34  ;;  %v600_v14 = vmul.f32 %v547_v13, %v503_v43  ;;  %v861_v45 = vmul.f32 %v1843_v33, %v1843_v33  ;;  %v815_v13 = vmul.f32 0.6931472, %v1490_v59  ;;  %v1140_v59 = vld [vmem:[#allocation5 + $0x108] ss:$0 sm:$0xff] }
  0xf0   :  { %1370 = vmatpush3.bf16.msra.mxu0 %v1369_v11  ;;  %v696_v48 = vadd.f32 %v643_v42, %v600_v14 }
  0xf1   :  { %1371 = vmatprep.subr.bf16.mxu0 %v1616_v0  ;;  %v562_v19 = vpop.permute.xlu0 %561 }
  0xf2   :  { %v572_v27 = vpop.permute.xlu1 %571  ;;  %v1372_v61 = vpack.c.bf16 %v697_v4, %v696_v48  ;;  %v603_v52 = vmul.f32 %v562_v19, %v506_v49  ;;  %v842_v4 = vsub.f32 0.0, %v811_v22  ;;  %v845_v48 = vsub.f32 0.0, %v817_v2 }
  0xf3   :  { %v605_v46 = vmul.f32 %v572_v27, %v508_v44  ;;  %v844_v49 = vsub.f32 0.0, %v815_v13 }
  0xf4   :  { %1373 = vmatpush3.bf16.msra.mxu0 %v1372_v61  ;;  %v699_v50 = vadd.f32 %v658_v38, %v603_v52  ;;  %v843_v38 = vsub.f32 0.0, %v813_v35 }
  0xf5   :  { %1374 = vmatprep.subr.bf16.mxu0 %v1616_v0  ;;  %v567_v54 = vpop.permute.xlu0 %566 }
  0xf6   :  { %v1375_v56 = vpack.c.bf16 %v699_v50, %v698_v51  ;;  %v604_v57 = vmul.f32 %v567_v54, %v507_v32 }
  0xf7   :  { %v668_v39 = vpop.permute.xlu1 %667 }
  0xf8   :  { %v701_v55 = vadd.f32 %v668_v39, %v605_v46  ;;  %v700_v62 = vadd.f32 %v2042_v47, %v604_v57  ;;  %1376 = vmatpush3.bf16.msra.mxu0 %v1375_v56 }
  0xf9   :  { %1377 = vmatprep.subr.bf16.mxu0 %v1616_v0 }
  0xfa   :  { %v1378_v3 = vpack.c.bf16 %v701_v55, %v700_v62  ;;  %v1091_v62 = vmul.f32 %v2039_v53, %v2039_v53 }
  0xfc   :  { %v577_v42 = vpop.permute.xlu1 %576  ;;  %1379 = vmatpush3.bf16.msra.mxu0 %v1378_v3 }
  0xfd   :  { %1380 = vmatprep.subr.bf16.mxu0 %v1616_v0  ;;  %v606_v41 = vmul.f32 %v577_v42, %v509_v15  ;;  %v1492_v42 = vpop.eup %1491 }
 0x100   :  { %v582_v5 = vpop.permute.xlu0 %581 }
 0x101   :  { %v673_v40 = vpop.permute.xlu1 %672  ;;  %v607_v8 = vmul.f32 %v582_v5, %v510_v63  ;;  %v1089_v5 = vmul.f32 0.6931472, %v1492_v42 }
 0x102   :  { %v702_v47 = vadd.f32 %v673_v40, %v606_v41 }
 0x104   :  { %v587_v12 = vpop.permute.xlu0 %586 }
 0x105   :  { %v678_v7 = vpop.permute.xlu1 %677  ;;  %v608_v6 = vmul.f32 %v587_v12, %v511_v10 }
 0x106   :  { %v703_v9 = vadd.f32 %v678_v7, %v607_v8 }
 0x108   :  { %v1381_v17 = vpack.c.bf16 %v703_v9, %v702_v47  ;;  %v1090_v9 = vsub.f32 0.0, %v1089_v5 }
 0x109   :  { %v683_v26 = vpop.permute.xlu0 %682 }
 0x10a   :  { %v592_v37 = vpop.permute.xlu1 %591  ;;  %1382 = vmatpush3.bf16.msra.mxu0 %v1381_v17  ;;  %v704_v30 = vadd.f32 %v683_v26, %v608_v6  ;;  %v1139_v17 = vld [vmem:[#allocation5 + $0x80] ss:$0 sm:$0xff] }
 0x10b   :  { %v609_v1 = vmul.f32 %v592_v37, %v512_v21  ;;  %1383 = vmatprep.subr.bf16.mxu0 %v1616_v0 }
 0x10d   :  { %v909_v58 = vpop.permute.xlu0 %908 }
 0x10e   :  { %v955_v43 = vadd.f32 %v909_v58, %v859_v20 }
 0x10f   :  { %v688_v31 = vpop.permute.xlu1 %687 }
 0x110   :  { %v705_v34 = vadd.f32 %v688_v31, %v609_v1  ;;  %v971_v60 = vmul.f32 0.5, %v955_v43 }
 0x111   :  { %v913_v24 = vpop.permute.xlu0 %912 }
 0x112   :  { %v1384_v0 = vpack.c.bf16 %v705_v34, %v704_v30  ;;  %v987_v27 = vadd.f32 %v971_v60, %v843_v38  ;;  %v957_v33 = vadd.f32 %v913_v24, %v861_v45 }
 0x113   :  { %v907_v11 = vpop.permute.xlu1 %906 }
 0x114   :  { %v954_v14 = vadd.f32 %v907_v11, %v858_v36  ;;  %1385 = vmatpush3.bf16.msra.mxu0 %v1384_v0  ;;  %v1142_v51 = vadd.f32 -0.5, %v987_v27  ;;  %v973_v52 = vmul.f32 0.5, %v957_v33 }
 0x116   :  { %v970_v44 = vmul.f32 0.5, %v954_v14  ;;  %v1052_v18 = vsel %vm1050_vm3, %v1142_v51, 0.0  ;;  %v989_v50 = vadd.f32 %v973_v52, %v845_v48 }
 0x117   :  { %v911_v61 = vpop.permute.xlu1 %910 }
 0x118   :  { %v986_v19 = vadd.f32 %v970_v44, %v842_v4  ;;  %v956_v46 = vadd.f32 %v911_v61, %v860_v28  ;;  %v1144_v56 = vadd.f32 -0.5, %v989_v50 }
 0x11a   :  { %v1141_v32 = vadd.f32 -0.5, %v986_v19  ;;  %v972_v39 = vmul.f32 0.5, %v956_v46  ;;  %v1056_v40 = vsel %vm1050_vm3, %v1144_v56, 0.0 }
 0x11b   :  { %v1095_v15 = vpop.permute.xlu1 %1094 }
 0x11c   :  { %v1051_v54 = vsel %vm1050_vm3, %v1141_v32, 0.0  ;;  %v988_v55 = vadd.f32 %v972_v39, %v844_v49  ;;  %v1097_v47 = vadd.f32 %v1095_v15, %v1091_v62 }
 0x11d   :  { %v1053_v57 = vadd.f32 %v1052_v18, %v1051_v54 }
 0x11e   :  { %v1143_v3 = vadd.f32 -0.5, %v988_v55  ;;  %v1098_v10 = vmul.f32 0.5, %v1097_v47 }
 0x120   :  { %v1054_v41 = vsel %vm1050_vm3, %v1143_v3, 0.0  ;;  %v1099_v21 = vadd.f32 %v1098_v10, %v1090_v9 }
 0x121   :  { %v1055_v63 = vadd.f32 %v1054_v41, %v1053_v57 }
 0x122   :  { %v1157_v26 = vadd.f32 -0.5, %v1099_v21 }
 0x123   :  { %v1057_v7 = vadd.f32 %v1056_v40, %v1055_v63 }
 0x125   :  { %v1082_v8 = vrot.slane %v1057_v7, 4 }
 0x127   :  { %v1083_v12 = vadd.f32 %v1082_v8, %v1057_v7 }
 0x129   :  { %v1084_v37 = vrot.slane %v1083_v12, 2 }
 0x12b   :  { %v1085_v1 = vadd.f32 %v1084_v37, %v1083_v12 }
 0x12d   :  { %v145_v6 = vpop.f32.mrb[0].mxu0  ;;  %v1086_v30 = vrot.slane %v1085_v1, 1 }
 0x12e   :  { %v146_v53 = vadd.f32 %v1139_v17, %v145_v6  ;;  %v1243_v23 = vpop.f32.mrb[1].mxu0 }
 0x12f   :  { %v1087_v35 = vadd.f32 %v1086_v30, %v1085_v1 }
 0x130   :  { %v149_v25 = vmax.f32 %v146_v53, 0.0 }
 0x131   :  { %v1101_v20 = vadd.f32 %v1157_v26, %v1087_v35 }
 0x132   :  { %1277 = vmatmul.mubr.f32.vlgmr.msra.gmra.mrb[0].mxu1 %v149_v25 }
 0x133   :  { %1103 = vrot.lane.b32.xlu0 %v1101_v20, %s1622_s25 }
 0x137   :  { %714 = vperm.xlu0 %1412, %v2031_v29  }
 0x1a5   :  { %v1104_v16 = vpop.permute.xlu0 %1103 }
 0x1a6   :  { %1386 = vpush %v1104_v16 }
 0x1d7   :  { %s1387_s26 = spop %1386 }
 0x1d8   :  { %v1106_v31 = vstv %s1387_s26 }
 0x1d9   :  { %1108 = vst [vmem:[#allocation9] sm:$0xff] %v1106_v31 }
 0x205   :  { %v237_v34 = vpop.f32.mrb[0].mxu1 }
 0x206   :  { %v238_v22 = vadd.f32 %v1140_v59, %v237_v34  ;;  %v1278_v36 = vpop.f32.mrb[1].mxu1 }
 0x208   :  { %v241_v58 = vmax.f32 %v238_v22, 0.0 }
 0x20a   :  { %1312 = vmatmul.mubr.f32.vlgmr.msra.gmra.mrb[2].mxu0 %v241_v58 }
 0x20b   :  { %1570 = shalt.err (!%p1567_p0)
}
 0x20c   :  { %s1571_s6 = scalar_lea.hbm %s2100_s4, 128 }
 0x20d   :  { %p1572_p1 = scmp.ne.s32.totalorder %s2100_s4, %s1571_s6  ;;  %p1575_p2 = scmp.lt.u32.totalorder %s1571_s6, %s2100_s4 }
 0x20f   :  { %p1577_p3 = pnand %p1575_p2, %p1572_p1 }
 0x211   :  { %1580 = shalt.err (!%p1577_p3)
}
 0x212   :  { %1128 = dma.vmem_to_hbm [thread:$0]  %s1126_s28, 128, %s2100_s4, [#allocation10]   ;;  %v718_v29 = vlaneseq  ;;  %v513_v45 = vld [vmem:[#allocation7 + $0x80] sm:$0x1]  ;;  %v709_v0 = vpop.permute.xlu1 %708  ;;  %v715_v2 = vpop.permute.xlu0 %714 }
 0x213   :  { %v711_v38 = vmul.f32 %v709_v0, %v513_v45  ;;  %s1624_s13 = smov [#allocation8]  }
 0x214   :  { %v719_v43 = vshrl.u32 %v718_v29, 7  ;;  %s1115_s1 = sshll.u32 %s1624_s13, 4  ;;  %s1116_s1 = int_to_ptr.vmem [resolvable:$true] %s1115_s1 }
 0x215   :  { %v717_v11 = vadd.f32 %v715_v2, %v711_v38  ;;  %s1581_s14 = scalar_lea.vmem %s1116_s1, 128  ;;  %p1586_p5 = scmp.lt.s32.totalorder %s1116_s1, %s1116_s1 }
 0x216   :  { %v720_v13 = vsub.s32 0, %v719_v43  ;;  %p1582_p4 = scmp.ne.s32.totalorder %s1116_s1, %s1581_s14  ;;  %p1587_p6 = scmp.lt.s32.totalorder %s1581_s14, %s1581_s14 }
 0x218   :  { %v721_v28 = vrot.slane %v717_v11, %v720_v13  ;;  %p1588_p7 = por %p1587_p6, %p1586_p5 }
 0x21a   :  { %p1589_p8 = pnand %p1588_p7, %p1582_p4 }
 0x2dd   :  { %v788_v4 = vpop.f32.mrb[2].mxu0 }
 0x2de   :  { %v789_v14 = vadd.f32 %v788_v4, %v721_v28  ;;  %v1313_v60 = vpop.f32.mrb[3].mxu0 }
 0x2e0   :  { %792 = vst [vmem:[#allocation8] sm:$0xff] %v789_v14 }
 0x2e1   :  { %1592 = shalt.err (!%p1589_p8)
}
 0x2e2   :  { %s1593_s16 = scalar_lea.hbm %s2099_s3, 128 }
 0x2e3   :  { %p1594_p9 = scmp.ne.s32.totalorder %s2099_s3, %s1593_s16  ;;  %p1597_p10 = scmp.lt.u32.totalorder %s1593_s16, %s2099_s3 }
 0x2e5   :  { %p1599_p11 = pnand %p1597_p10, %p1594_p9 }
 0x2e7   :  { %1602 = shalt.err (!%p1599_p11)
}
 0x2e8   :  { %1118 = dma.vmem_to_hbm [thread:$0]  %s1116_s1, 128, %s2099_s3, [#allocation4]  }
 0x2e9   :  { %1607 = dma.done.wait [#allocation4], 128  }
 0x2ea   :  { %1608 = vsyncadd [#allocation4], 4294967168 }
 0x2eb   :  { %1609 = dma.done.wait [#allocation10], 128  }
 0x2ec   :  { %1610 = vsyncadd [#allocation10], 4294967168 }
 0x2ed   :  { %1135 = vsyncpa [#allocation3], 1 }
 0x2ee   :  { %1136 = vsyncpa [#allocation6], 1 }
 0x2ef   :  { %1137 = vsyncpa [#allocation4], 1 }
 0x2f0   :  { %1138 = vsyncpa [#allocation10], 1 }

</bundles_post_ra>
